<compile_context>
chip_gen: v5e
topology: v5e:2x2
jax: 0.10.0
libtpu: 0.0.40
codegen_flags: <defaults>
</compile_context>

<pallas_src>
import functools
from typing import NamedTuple

import jax
import jax.numpy as jnp
from jax.experimental import pallas as pl
from jax.experimental.pallas import tpu as pltpu


def _round_up(x, m):
    return (x + m - 1) // m * m


def _vmem_capacity_bytes():
    """Generation-aware VMEM capacity (v5e/v6e: 128 MiB, v7x: 64 MiB per TC)."""
    try:
        return int(pltpu.get_tpu_info().vmem_capacity_bytes)
    except Exception:
        return 64 << 20  # conservative fallback (v7x per-TC size)


def _mlp_kernel(x_ref, wlr_ref, wp_ref, o_ref, acc_ref, *, th, compute_dtype):
    # x_ref   : (TN, d_model)      token tile in the caller's dtype (cast in-kernel)
    # wlr_ref : (d_model, 2*TH)    fused [wl_k | wr_k] bilinear weight tile (bf16)
    # wp_ref  : (TH, d_model)      projection weight tile (bf16, pre-transposed)
    # o_ref   : (TN, d_model)      output tile (same block across the hidden/K axis)
    # acc_ref : (TN, d_model)      f32 accumulator, persists across K steps
    k = pl.program_id(1)

    @pl.when(k == 0)
    def _():
        acc_ref[...] = jnp.zeros_like(acc_ref)

    x = x_ref[...].astype(compute_dtype)
    # Single fused MXU matmul for both bilinear halves, then split with
    # contiguous, 128-aligned lane slices.
    lr = jnp.dot(x, wlr_ref[...], preferred_element_type=jnp.float32)
    h = lr[:, :th] * lr[:, th:]  # bilinear gate (gate=None), f32 on the VPU
    acc_ref[...] += jnp.dot(h.astype(wp_ref.dtype), wp_ref[...],
                            preferred_element_type=jnp.float32)

    @pl.when(k == pl.num_programs(1) - 1)
    def _():
        o_ref[...] = acc_ref[...].astype(o_ref.dtype)


class MLPParams(NamedTuple):
    wlr: jax.Array        # (d_model, 2*Hp): per hidden tile k, columns [wl_k | wr_k]
    wp: jax.Array         # (Hp, d_model)
    d_model: int
    d_hidden: int         # original H
    hp: int                # padded hidden dim
    th: int                # hidden tile size
    compute_dtype: object  # matmul dtype (bf16)


def prepare_weights(wl, wr, wp, *, block_h=512, compute_dtype=jnp.bfloat16):
    """One-time weight preparation (cast + pad + fuse), hoisted out of the hot path.

    wl/wr: (d_model, d_hidden) pre-transposed bilinear halves; wp: (d_hidden, d_model).
    """
    d_model, H = wl.shape
    assert wr.shape == (d_model, H)
    assert wp.shape == (H, d_model)

    bpe = jnp.dtype(compute_dtype).itemsize
    cap = _vmem_capacity_bytes()

    # Weights-resident path: if all bf16 weights fit (double-buffered) in ~half of VMEM,
    # keep the full hidden dim as a single tile (grid_k = 1).  The weight block indices
    # are then constant across the grid, so the weights are DMA'd exactly once.
    hp_full = _round_up(H, 128)
    weight_bytes_full = 3 * d_model * hp_full * bpe
    if 2 * weight_bytes_full <= cap // 2:
        th = hp_full
    else:
        th = min(_round_up(block_h, 128), hp_full)
    hp = _round_up(H, th)
    grid_k = hp // th

    wl_c = wl.astype(compute_dtype)
    wr_c = wr.astype(compute_dtype)
    wp_c = wp.astype(compute_dtype)
    # Zero-pad: padded hidden columns of wl/wr make h == 0 there, so padded wp rows
    # contribute nothing to the output.
    if hp != H:
        wl_c = jnp.pad(wl_c, ((0, 0), (0, hp - H)))
        wr_c = jnp.pad(wr_c, ((0, 0), (0, hp - H)))
        wp_c = jnp.pad(wp_c, ((0, hp - H), (0, 0)))

    # Tile-interleaved fusion: block k of width 2*th holds [wl_k | wr_k].
    wlr = jnp.concatenate(
        [wl_c.reshape(d_model, grid_k, th), wr_c.reshape(d_model, grid_k, th)],
        axis=2,
    ).reshape(d_model, 2 * hp)

    return MLPParams(wlr=wlr, wp=wp_c, d_model=d_model, d_hidden=H, hp=hp,
                     th=th, compute_dtype=compute_dtype)


def mlp_forward(x, params: MLPParams, *, block_n=1024):
    """x: (..., d_model); params: output of prepare_weights."""
    orig_shape = x.shape
    d_model = orig_shape[-1]
    assert d_model == params.d_model
    x2d = x.reshape(-1, d_model)
    N = x2d.shape[0]
    out_dtype = x.dtype

    th = params.th
    hp = params.hp
    compute_dtype = params.compute_dtype

    # Token tile: multiple of 16 (bf16 sublane packing).  Large default so weight
    # streaming (when grid_k > 1) stays hidden behind MXU work.
    tn = min(block_n, _round_up(N, 16))
    # Keep >= 2 token tiles when there is enough work, so the "parallel" axis can be
    # split across the two TensorCores on v7x.
    if _round_up(N, tn) // tn < 2 and N >= 1024:
        tn = _round_up((N + 1) // 2, 16)
    np_ = _round_up(N, tn)
    if np_ != N:
        x2d = jnp.pad(x2d, ((0, np_ - N), (0, 0)))

    grid = (np_ // tn, hp // th)
    grid_i, grid_k = grid

    bpe = jnp.dtype(compute_dtype).itemsize
    x_bpe = jnp.dtype(x.dtype).itemsize
    out_bpe = jnp.dtype(out_dtype).itemsize

    # Advisory cost for XLA scheduling.  Weights are re-read per token tile only when
    # grid_k > 1 (block index changes); in the resident path they are read once.
    flops = 2 * np_ * d_model * hp * 3
    weight_bytes = 3 * d_model * hp * bpe
    weight_reads = 1 if grid_k == 1 else grid_i
    bytes_accessed = int(np_ * d_model * x_bpe
                         + weight_reads * weight_bytes
                         + np_ * d_model * out_bpe)
    cost = pl.CostEstimate(flops=int(flops), transcendentals=0,
                           bytes_accessed=bytes_accessed)

    # VMEM budget: double-buffered tiles + f32 accumulator + in-kernel temporaries
    # (lr f32 (TN,2*TH) + h f32 (TN,TH) + h bf16 (TN,TH)), clamped to device capacity.
    vmem_needed = (
        2 * tn * d_model * x_bpe          # x tiles
        + 2 * (2 * d_model * th) * bpe    # fused wlr tiles
        + 2 * th * d_model * bpe          # wp tiles
        + 2 * tn * d_model * out_bpe      # out tiles
        + tn * d_model * 4                # f32 accumulator
        + tn * th * 14                    # lr / h temporaries
        + (4 << 20)                       # slack
    )
    cap = _vmem_capacity_bytes()
    vmem_limit = int(min(max(vmem_needed, 32 << 20), cap))

    out = pl.pallas_call(
        functools.partial(_mlp_kernel, th=th, compute_dtype=compute_dtype),
        out_shape=jax.ShapeDtypeStruct((np_, d_model), out_dtype),
        grid_spec=pltpu.PrefetchScalarGridSpec(
            num_scalar_prefetch=0,
            grid=grid,
            in_specs=[
                pl.BlockSpec((tn, d_model), lambda i, k: (i, 0)),
                pl.BlockSpec((d_model, 2 * th), lambda i, k: (0, k)),
                pl.BlockSpec((th, d_model), lambda i, k: (k, 0)),
            ],
            out_specs=pl.BlockSpec((tn, d_model), lambda i, k: (i, 0)),
            scratch_shapes=[pltpu.VMEM((tn, d_model), jnp.float32)],
        ),
        compiler_params=pltpu.CompilerParams(
            dimension_semantics=("parallel", "arbitrary"),
            vmem_limit_bytes=vmem_limit,
        ),
        cost_estimate=cost,
    )(x2d, params.wlr, params.wp)

    if np_ != N:
        out = out[:N]
    return out.reshape(orig_shape)


def init_params(key, d_model, d_hidden):
    """Mirrors nn.Linear's uniform(-1/sqrt(fan_in), +1/sqrt(fan_in)) init.

    PyTorch stores the Bilinear weight as (2*d_hidden, d_model); we keep the two halves
    pre-transposed as (d_model, d_hidden).  The projection weight (d_model, d_hidden) is
    stored transposed as (d_hidden, d_model).
    """
    k1, k2, k3 = jax.random.split(key, 3)
    bound_w = 1.0 / (d_model ** 0.5)
    bound_p = 1.0 / (d_hidden ** 0.5)
    wl = jax.random.uniform(k1, (d_model, d_hidden), jnp.float32, -bound_w, bound_w)
    wr = jax.random.uniform(k2, (d_model, d_hidden), jnp.float32, -bound_w, bound_w)
    wp = jax.random.uniform(k3, (d_hidden, d_model), jnp.float32, -bound_p, bound_p)
    return wl, wr, wp


# TODO(synk): Noise module is training-only (randn * scale * std); eval-mode forward is the
# identity, so it is intentionally not implemented in the kernel.

if __name__ == "__main__":
    key = jax.random.PRNGKey(0)
    kx, kp = jax.random.split(key)

    # Small but lane-dense shapes (d_model / d_hidden multiples of 128).
    batch, seq, d_model, d_hidden = 2, 8, 128, 256
    x = jax.random.normal(kx, (batch, seq, d_model), jnp.float32)
    wl, wr, wp = init_params(kp, d_model, d_hidden)

    # One-time weight preparation (cast/pad/fuse hoisted out of the forward hot path).
    params = prepare_weights(wl, wr, wp)

    out = mlp_forward(x, params)
    out = jax.block_until_ready(out)
    assert out.shape == (batch, seq, d_model)
    assert out.dtype == x.dtype

    # Reference 1: same precision recipe (bf16 matmuls, f32 accumulate) in plain JAX.
    x2d = x.reshape(-1, d_model)
    xb = x2d.astype(jnp.bfloat16)
    lb = jnp.dot(xb, wl.astype(jnp.bfloat16), preferred_element_type=jnp.float32)
    rb = jnp.dot(xb, wr.astype(jnp.bfloat16), preferred_element_type=jnp.float32)
    hb = (lb * rb).astype(jnp.bfloat16)
    ref_bf16 = jnp.dot(hb, wp.astype(jnp.bfloat16),
                       preferred_element_type=jnp.float32).astype(x.dtype)
    ref_bf16 = ref_bf16.reshape(batch, seq, d_model)
    assert jnp.allclose(out, ref_bf16, atol=1e-2, rtol=1e-2), "mismatch vs bf16 reference"

    # Reference 2: full-f32 semantics of the PyTorch module (looser tol for bf16 matmuls).
    ref_f32 = (((x2d @ wl) * (x2d @ wr)) @ wp).reshape(batch, seq, d_model)
    max_err = float(jnp.max(jnp.abs(out - ref_f32)))
    assert max_err < 5e-2, f"mismatch vs f32 reference: {max_err}"

    print("KERNEL_OK")
</pallas_src>

<mosaic_0001>
module attributes {stable_mosaic.version = 11 : i64} {
  func.func @_mlp_kernel(%arg0: i32, %arg1: i32, %arg2: memref<16x128xf32, #tpu.memory_space<vmem>>, %arg3: memref<128x512xbf16, #tpu.memory_space<vmem>>, %arg4: memref<256x128xbf16, #tpu.memory_space<vmem>>, %arg5: memref<16x128xf32, #tpu.memory_space<vmem>>, %arg6: memref<16x128xf32, #tpu.memory_space<vmem>>) attributes {dimension_semantics = [#tpu.dimension_semantics<parallel>, #tpu.dimension_semantics<arbitrary>], iteration_bounds = array<i64: 1, 1>, scalar_prefetch = 0 : i64, scratch_operands = 1 : i64, tpu.core_type = #tpu.core_type<tc>, window_params = [{transform_indices = @transform_0, window_bounds = array<i64: 16, 128>}, {transform_indices = @transform_1, window_bounds = array<i64: 128, 512>}, {transform_indices = @transform_2, window_bounds = array<i64: 256, 128>}, {transform_indices = @transform_3, window_bounds = array<i64: 16, 128>}]} {
    %c0_i32 = arith.constant 0 : i32
    %0 = arith.cmpi eq, %arg1, %c0_i32 : i32
    %1 = arith.extui %0 : i1 to i32
    %c0_i32_0 = arith.constant 0 : i32
    %2 = arith.cmpi ne, %1, %c0_i32_0 : i32
    scf.if %2 {
      %cst_13 = arith.constant 0.000000e+00 : f32
      %19 = vector.broadcast %cst_13 : f32 to vector<16x128xf32>
      %c0_14 = arith.constant 0 : index
      %c0_15 = arith.constant 0 : index
      %20 = vector.load %arg6[%c0_14, %c0_15] : memref<16x128xf32, #tpu.memory_space<vmem>>, vector<16x128xf32>
      tpu.vector_store %arg6[%c0_14, %c0_15], %19 {strides = array<i32>} : memref<16x128xf32, #tpu.memory_space<vmem>>, vector<16x128xf32>,
    } else {
    }
    %c0 = arith.constant 0 : index
    %c0_1 = arith.constant 0 : index
    %3 = vector.load %arg2[%c0, %c0_1] : memref<16x128xf32, #tpu.memory_space<vmem>>, vector<16x128xf32>
    %4 = arith.truncf %3 : vector<16x128xf32> to vector<16x128xbf16>
    %c0_2 = arith.constant 0 : index
    %c0_3 = arith.constant 0 : index
    %5 = vector.load %arg3[%c0_2, %c0_3] : memref<128x512xbf16, #tpu.memory_space<vmem>>, vector<128x512xbf16>
    %cst = arith.constant dense<0.000000e+00> : vector<16x512xf32>
    %6 = tpu.matmul %4, %5, %cst {dimension_numbers = #tpu.dot_dimension_numbers<[1], [0], [0], [1], [0, 0, 1, 1], [], []>} : vector<16x128xbf16>, vector<128x512xbf16>, vector<16x512xf32> -> vector<16x512xf32>
    %7 = vector.extract_strided_slice %6 {offsets = [0, 0], sizes = [16, 256], strides = [1, 1]} : vector<16x512xf32> to vector<16x256xf32>
    %8 = vector.extract_strided_slice %6 {offsets = [0, 256], sizes = [16, 256], strides = [1, 1]} : vector<16x512xf32> to vector<16x256xf32>
    %9 = arith.mulf %7, %8 : vector<16x256xf32>
    %c0_4 = arith.constant 0 : index
    %c0_5 = arith.constant 0 : index
    %10 = vector.load %arg6[%c0_4, %c0_5] : memref<16x128xf32, #tpu.memory_space<vmem>>, vector<16x128xf32>
    %11 = arith.truncf %9 : vector<16x256xf32> to vector<16x256xbf16>
    %c0_6 = arith.constant 0 : index
    %c0_7 = arith.constant 0 : index
    %12 = vector.load %arg4[%c0_6, %c0_7] : memref<256x128xbf16, #tpu.memory_space<vmem>>, vector<256x128xbf16>
    %cst_8 = arith.constant dense<0.000000e+00> : vector<16x128xf32>
    %13 = tpu.matmul %11, %12, %cst_8 {dimension_numbers = #tpu.dot_dimension_numbers<[1], [0], [0], [1], [0, 0, 1, 1], [], []>} : vector<16x256xbf16>, vector<256x128xbf16>, vector<16x128xf32> -> vector<16x128xf32>
    %14 = arith.addf %10, %13 : vector<16x128xf32>
    %c0_9 = arith.constant 0 : index
    %c0_10 = arith.constant 0 : index
    %15 = vector.load %arg6[%c0_9, %c0_10] : memref<16x128xf32, #tpu.memory_space<vmem>>, vector<16x128xf32>
    tpu.vector_store %arg6[%c0_9, %c0_10], %14 {strides = array<i32>} : memref<16x128xf32, #tpu.memory_space<vmem>>, vector<16x128xf32>,
    %c0_i32_11 = arith.constant 0 : i32
    %16 = arith.cmpi eq, %arg1, %c0_i32_11 : i32
    %17 = arith.extui %16 : i1 to i32
    %c0_i32_12 = arith.constant 0 : i32
    %18 = arith.cmpi ne, %17, %c0_i32_12 : i32
    scf.if %18 {
      %c0_13 = arith.constant 0 : index
      %c0_14 = arith.constant 0 : index
      %19 = vector.load %arg6[%c0_13, %c0_14] : memref<16x128xf32, #tpu.memory_space<vmem>>, vector<16x128xf32>
      %c0_15 = arith.constant 0 : index
      %c0_16 = arith.constant 0 : index
      %20 = vector.load %arg5[%c0_15, %c0_16] : memref<16x128xf32, #tpu.memory_space<vmem>>, vector<16x128xf32>
      tpu.vector_store %arg5[%c0_15, %c0_16], %19 {strides = array<i32>} : memref<16x128xf32, #tpu.memory_space<vmem>>, vector<16x128xf32>,
    } else {
    }
    return
  }
  func.func @transform_0(%arg0: i32, %arg1: i32) -> (i32, i32) {
    %c0_i32 = arith.constant 0 : i32
    %c0_i32_0 = arith.constant 0 : i32
    return %arg0, %c0_i32 : i32, i32
  }
  func.func @transform_1(%arg0: i32, %arg1: i32) -> (i32, i32) {
    %c0_i32 = arith.constant 0 : i32
    %c0_i32_0 = arith.constant 0 : i32
    return %c0_i32, %arg1 : i32, i32
  }
  func.func @transform_2(%arg0: i32, %arg1: i32) -> (i32, i32) {
    %c0_i32 = arith.constant 0 : i32
    %c0_i32_0 = arith.constant 0 : i32
    return %arg1, %c0_i32 : i32, i32
  }
  func.func @transform_3(%arg0: i32, %arg1: i32) -> (i32, i32) {
    %c0_i32 = arith.constant 0 : i32
    %c0_i32_0 = arith.constant 0 : i32
    return %arg0, %c0_i32 : i32, i32
  }
}

</mosaic_0001>

<bundles_post_ra>
// kernel: tpu_custom_call.1
= control target key start
LH: loop header
LB: loop body
LE: loop exit
PB: predicated region body
PF: predicated region fallthrough
CT: control target
= control target key end

     0   :  { %8 = vsyncpa [#allocation4], 0  ;;  %s914_s0 = inlined_call_operand.hbm [shape: f32[16,128], index: 0, kind: input, shape index: {}]   ;;  %s915_s1 = inlined_call_operand.hbm [shape: bf16[128,512], index: 1, kind: input, shape index: {}]   ;;  %s916_s2 = inlined_call_operand.hbm [shape: bf16[256,128], index: 2, kind: input, shape index: {}]   ;;  %s917_s3 = inlined_call_operand.hbm [shape: f32[16,128], index: 3, kind: output, shape index: {}]  }
   0x1   :  { %9 = vsyncpa [#allocation7], 0  ;;  %s28_s14 = sshll.u32 %s915_s1, 4  ;;  %s29_s14 = int_to_ptr.hbm [resolvable:$true] %s28_s14 }
   0x2   :  { %10 = vsyncpa [#allocation5], 0  ;;  %s866_s15 = smov [#allocation6]   ;;  %s15_s19 = sshll.u32 %s914_s0, 4  ;;  %s16_s19 = int_to_ptr.hbm [resolvable:$true] %s15_s19 }
   0x3   :  { %s30_s16 = sshll.u32 %s866_s15, 4  ;;  %s867_s20 = smov 256   ;;  %s31_s16 = int_to_ptr.vmem [resolvable:$true] %s30_s16 }
   0x4   :  { %s868_s21 = smov 16   ;;  %s869_s22 = smov [#allocation3]  }
   0x5   :  { %36 = dma.hbm_to_vmem [thread:$0]  %s29_s14, 4096, %s31_s16, [#allocation7], %s867_s20, %s867_s20, %s868_s21  }
   0x6   :  { %s17_s23 = sshll.u32 %s869_s22, 4  ;;  %s870_s24 = smov 128   ;;  %s18_s23 = int_to_ptr.vmem [resolvable:$true] %s17_s23 }
   0x7   :  { %s871_s25 = smov 8   ;;  %s41_s27 = sshll.u32 %s916_s2, 4  ;;  %s42_s27 = int_to_ptr.hbm [resolvable:$true] %s41_s27 }
   0x8   :  { %23 = dma.hbm_to_vmem [thread:$0]  %s16_s19, 256, %s18_s23, [#allocation4], %s870_s24, %s870_s24, %s871_s25  }
   0x9   :  { %s872_s28 = smov [#allocation8]   ;;  %s873_s29 = smov 64  }
   0xa   :  { %s43_s0 = sshll.u32 %s872_s28, 4  ;;  %s874_s30 = smov 4   ;;  %s44_s0 = int_to_ptr.vmem [resolvable:$true] %s43_s0 }
   0xb   :  { %49 = dma.hbm_to_vmem [thread:$0]  %s42_s27, 2048, %s44_s0, [#allocation7], %s873_s29, %s873_s29, %s874_s30  }
   0xc   :  { %860 = dma.done.wait [#allocation4], 256  }
   0xd   :  { %861 = vsyncadd [#allocation4], 4294967040 }
   0xe   :  { %862 = dma.done.wait [#allocation7], 6144  }
   0xf   :  { %863 = vsyncadd [#allocation7], 4294961152  ;;  %v628_v0 = vld [vmem:[#allocation6 + $0xe0] sm:$0xf]  ;;  %v736_v1 = vld [vmem:[#allocation6 + $0xec] sm:$0xf0] }
  0x10   :  { %v734_v2 = vld [vmem:[#allocation6 + $0xe4] sm:$0xf]  ;;  %v629_v3 = vor.u32 %v736_v1, %v628_v0  ;;  %v630_v4 = vld [vmem:[#allocation6 + $0xf0] sm:$0xf0]  ;;  %v636_v5 = vld [vmem:[#allocation6 + $0xe8] sm:$0xf] }
  0x11   :  { %v737_v6 = vld [vmem:[#allocation6 + $0xf4] sm:$0xf0]  ;;  %v633_v7 = vor.u32 %v734_v2, %v630_v4  ;;  %v735_v9 = vld [vmem:[#allocation6 + $0xec] sm:$0xf]  ;;  %v638_v10 = vld [vmem:[#allocation6 + $0xf8] sm:$0xf0] }
  0x12   :  { %v637_v8 = vor.u32 %v737_v6, %v636_v5  ;;  %v612_v11 = vld [vmem:[#allocation6 + $0xc0] sm:$0xf]  ;;  %263 = vmatpush.bf16.msra.mxu0 %v629_v3  ;;  %v641_v12 = vor.u32 %v735_v9, %v638_v10  ;;  %v732_v13 = vld [vmem:[#allocation6 + $0xcc] sm:$0xf0]  ;;  %v730_v14 = vld [vmem:[#allocation6 + $0xc4] sm:$0xf] }
  0x13   :  { %v614_v15 = vld [vmem:[#allocation6 + $0xd0] sm:$0xf0]  ;;  %277 = vmatpush.bf16.msra.mxu1 %v633_v7  ;;  %v613_v16 = vor.u32 %v732_v13, %v612_v11  ;;  %v620_v18 = vld [vmem:[#allocation6 + $0xc8] sm:$0xf]  ;;  %v733_v19 = vld [vmem:[#allocation6 + $0xd4] sm:$0xf0] }
  0x14   :  { %291 = vmatpush.bf16.msra.mxu2 %v637_v8  ;;  %v617_v17 = vor.u32 %v730_v14, %v614_v15  ;;  %v731_v20 = vld [vmem:[#allocation6 + $0xcc] sm:$0xf]  ;;  %305 = vmatpush.bf16.msra.mxu3 %v641_v12  ;;  %v621_v21 = vor.u32 %v733_v19, %v620_v18  ;;  %v622_v22 = vld [vmem:[#allocation6 + $0xd8] sm:$0xf0]  ;;  %v596_v23 = vld [vmem:[#allocation6 + $0xa0] sm:$0xf] }
  0x15   :  { %v728_v24 = vld [vmem:[#allocation6 + $0xac] sm:$0xf0]  ;;  %v625_v25 = vor.u32 %v731_v20, %v622_v22  ;;  %v726_v26 = vld [vmem:[#allocation6 + $0xa4] sm:$0xf]  ;;  %v598_v27 = vld [vmem:[#allocation6 + $0xb0] sm:$0xf0] }
  0x16   :  { %v604_v28 = vld [vmem:[#allocation6 + $0xa8] sm:$0xf]  ;;  %264 = vmatpush.bf16.msra.mxu0 %v613_v16  ;;  %v597_v29 = vor.u32 %v728_v24, %v596_v23  ;;  %v729_v30 = vld [vmem:[#allocation6 + $0xb4] sm:$0xf0]  ;;  %v727_v31 = vld [vmem:[#allocation6 + $0xac] sm:$0xf]  ;;  %v601_v33 = vor.u32 %v726_v26, %v598_v27 }
  0x17   :  { %v606_v32 = vld [vmem:[#allocation6 + $0xb8] sm:$0xf0]  ;;  %278 = vmatpush.bf16.msra.mxu1 %v617_v17  ;;  %v605_v34 = vor.u32 %v729_v30, %v604_v28  ;;  %v580_v35 = vld [vmem:[#allocation6 + $0x80] sm:$0xf]  ;;  %v724_v36 = vld [vmem:[#allocation6 + $0x8c] sm:$0xf0] }
  0x18   :  { %292 = vmatpush.bf16.msra.mxu2 %v621_v21  ;;  %v722_v37 = vld [vmem:[#allocation6 + $0x84] sm:$0xf]  ;;  %306 = vmatpush.bf16.msra.mxu3 %v625_v25  ;;  %v609_v38 = vor.u32 %v727_v31, %v606_v32  ;;  %v582_v39 = vld [vmem:[#allocation6 + $0x90] sm:$0xf0]  ;;  %v588_v40 = vld [vmem:[#allocation6 + $0x88] sm:$0xf]  ;;  %v581_v44 = vor.u32 %v724_v36, %v580_v35 }
  0x19   :  { %v725_v41 = vld [vmem:[#allocation6 + $0x94] sm:$0xf0]  ;;  %v723_v42 = vld [vmem:[#allocation6 + $0x8c] sm:$0xf]  ;;  %v590_v43 = vld [vmem:[#allocation6 + $0x98] sm:$0xf0]  ;;  %v585_v45 = vor.u32 %v722_v37, %v582_v39 }
  0x1a   :  { %265 = vmatpush.bf16.msra.mxu0 %v597_v29  ;;  %v589_v46 = vor.u32 %v725_v41, %v588_v40  ;;  %v564_v47 = vld [vmem:[#allocation6 + $0x60] sm:$0xf]  ;;  %v720_v48 = vld [vmem:[#allocation6 + $0x6c] sm:$0xf0]  ;;  %v718_v49 = vld [vmem:[#allocation6 + $0x64] sm:$0xf]  ;;  %v593_v50 = vor.u32 %v723_v42, %v590_v43 }
  0x1b   :  { %279 = vmatpush.bf16.msra.mxu1 %v601_v33  ;;  %v566_v51 = vld [vmem:[#allocation6 + $0x70] sm:$0xf0]  ;;  %v572_v52 = vld [vmem:[#allocation6 + $0x68] sm:$0xf]  ;;  %v721_v53 = vld [vmem:[#allocation6 + $0x74] sm:$0xf0]  ;;  %v565_v56 = vor.u32 %v720_v48, %v564_v47 }
  0x1c   :  { %293 = vmatpush.bf16.msra.mxu2 %v605_v34  ;;  %307 = vmatpush.bf16.msra.mxu3 %v609_v38  ;;  %v719_v54 = vld [vmem:[#allocation6 + $0x6c] sm:$0xf]  ;;  %v574_v55 = vld [vmem:[#allocation6 + $0x78] sm:$0xf0]  ;;  %v569_v57 = vor.u32 %v718_v49, %v566_v51  ;;  %v573_v58 = vor.u32 %v721_v53, %v572_v52  ;;  %v548_v59 = vld [vmem:[#allocation6 + $0x40] sm:$0xf] }
  0x1d   :  { %v716_v60 = vld [vmem:[#allocation6 + $0x4c] sm:$0xf0]  ;;  %v714_v61 = vld [vmem:[#allocation6 + $0x44] sm:$0xf]  ;;  %v577_v62 = vor.u32 %v719_v54, %v574_v55  ;;  %v550_v63 = vld [vmem:[#allocation6 + $0x50] sm:$0xf0] }
  0x1e   :  { %266 = vmatpush.bf16.msra.mxu0 %v581_v44  ;;  %v556_v0 = vld [vmem:[#allocation6 + $0x48] sm:$0xf]  ;;  %v717_v1 = vld [vmem:[#allocation6 + $0x54] sm:$0xf0]  ;;  %v715_v2 = vld [vmem:[#allocation6 + $0x4c] sm:$0xf]  ;;  %v549_v4 = vor.u32 %v716_v60, %v548_v59  ;;  %v553_v5 = vor.u32 %v714_v61, %v550_v63 }
  0x1f   :  { %280 = vmatpush.bf16.msra.mxu1 %v585_v45  ;;  %v558_v3 = vld [vmem:[#allocation6 + $0x58] sm:$0xf0]  ;;  %v557_v6 = vor.u32 %v717_v1, %v556_v0  ;;  %v532_v7 = vld [vmem:[#allocation6 + $0x20] sm:$0xf]  ;;  %v712_v8 = vld [vmem:[#allocation6 + $0x2c] sm:$0xf0] }
  0x20   :  { %294 = vmatpush.bf16.msra.mxu2 %v589_v46  ;;  %308 = vmatpush.bf16.msra.mxu3 %v593_v50  ;;  %v710_v9 = vld [vmem:[#allocation6 + $0x24] sm:$0xf]  ;;  %v561_v10 = vor.u32 %v715_v2, %v558_v3  ;;  %v534_v11 = vld [vmem:[#allocation6 + $0x30] sm:$0xf0]  ;;  %v540_v12 = vld [vmem:[#allocation6 + $0x28] sm:$0xf]  ;;  %v533_v16 = vor.u32 %v712_v8, %v532_v7 }
  0x21   :  { %v713_v13 = vld [vmem:[#allocation6 + $0x34] sm:$0xf0]  ;;  %v711_v14 = vld [vmem:[#allocation6 + $0x2c] sm:$0xf]  ;;  %v542_v15 = vld [vmem:[#allocation6 + $0x38] sm:$0xf0]  ;;  %v537_v17 = vor.u32 %v710_v9, %v534_v11 }
  0x22   :  { %267 = vmatpush.bf16.msra.mxu0 %v565_v56  ;;  %v541_v18 = vor.u32 %v713_v13, %v540_v12  ;;  %v516_v19 = vld [vmem:[#allocation6] sm:$0xf]  ;;  %v708_v20 = vld [vmem:[#allocation6 + $0xc] sm:$0xf0]  ;;  %v706_v21 = vld [vmem:[#allocation6 + $0x4] sm:$0xf]  ;;  %v545_v22 = vor.u32 %v711_v14, %v542_v15 }
  0x23   :  { %281 = vmatpush.bf16.msra.mxu1 %v569_v57  ;;  %v518_v23 = vld [vmem:[#allocation6 + $0x10] sm:$0xf0]  ;;  %v524_v24 = vld [vmem:[#allocation6 + $0x8] sm:$0xf]  ;;  %v709_v25 = vld [vmem:[#allocation6 + $0x14] sm:$0xf0]  ;;  %v517_v28 = vor.u32 %v708_v20, %v516_v19 }
  0x24   :  { %295 = vmatpush.bf16.msra.mxu2 %v573_v58  ;;  %309 = vmatpush.bf16.msra.mxu3 %v577_v62  ;;  %v707_v26 = vld [vmem:[#allocation6 + $0xc] sm:$0xf]  ;;  %v526_v27 = vld [vmem:[#allocation6 + $0x18] sm:$0xf0]  ;;  %v68_v29 = vld [vmem:[#allocation3] sm:$0xff]  ;;  %v521_v31 = vor.u32 %v706_v21, %v518_v23  ;;  %v525_v32 = vor.u32 %v709_v25, %v524_v24  ;;  %s875_s2 = smov [#allocation9]  }
  0x25   :  { %v69_v30 = vld [vmem:[#allocation3 + $0x8] sm:$0xff]  ;;  %v529_v33 = vor.u32 %v707_v26, %v526_v27  ;;  %v744_v37 = vld [vmem:[#allocation8 + $0x30] sm:$0xff]  ;;  %v743_v39 = vld [vmem:[#allocation8 + $0x28] sm:$0xff]  ;;  %s498_s4 = sshll.u32 %s875_s2, 4  ;;  %s500_s7 = sshll.u32 %s917_s3, 4  ;;  %s499_s4 = int_to_ptr.vmem [resolvable:$true] %s498_s4  ;;  %s501_s7 = int_to_ptr.hbm [resolvable:$true] %s500_s7 }
  0x26   :  { %268 = vmatpush.bf16.msra.mxu0 %v549_v4  ;;  %v745_v34 = vld [vmem:[#allocation8 + $0x38] sm:$0xff]  ;;  %v70_v35 = vpack.c.bf16 %v69_v30, %v68_v29  ;;  %v752_v38 = vld [vmem:[#allocation8 + $0x70] sm:$0xff]  ;;  %v751_v40 = vld [vmem:[#allocation8 + $0x68] sm:$0xff] }
  0x27   :  { %282 = vmatpush.bf16.msra.mxu1 %v553_v5  ;;  %v753_v36 = vld [vmem:[#allocation8 + $0x78] sm:$0xff]  ;;  %v742_v41 = vld [vmem:[#allocation8 + $0x20] sm:$0xff]  ;;  %v740_v45 = vld [vmem:[#allocation8 + $0x10] sm:$0xff] }
  0x28   :  { %296 = vmatpush.bf16.msra.mxu2 %v557_v6  ;;  %310 = vmatpush.bf16.msra.mxu3 %v561_v10  ;;  %v750_v42 = vld [vmem:[#allocation8 + $0x60] sm:$0xff]  ;;  %v741_v43 = vld [vmem:[#allocation8 + $0x18] sm:$0xff]  ;;  %v748_v46 = vld [vmem:[#allocation8 + $0x50] sm:$0xff] }
  0x29   :  { %v749_v44 = vld [vmem:[#allocation8 + $0x58] sm:$0xff]  ;;  %v739_v47 = vld [vmem:[#allocation8 + $0x8] sm:$0xff]  ;;  %v738_v49 = vld [vmem:[#allocation8] sm:$0xff] }
  0x2a   :  { %269 = vmatpush.bf16.msra.mxu0 %v533_v16  ;;  %v747_v48 = vld [vmem:[#allocation8 + $0x48] sm:$0xff]  ;;  %v746_v50 = vld [vmem:[#allocation8 + $0x40] sm:$0xff] }
  0x2b   :  { %283 = vmatpush.bf16.msra.mxu1 %v537_v17 }
  0x2c   :  { %297 = vmatpush.bf16.msra.mxu2 %v541_v18  ;;  %311 = vmatpush.bf16.msra.mxu3 %v545_v22 }
  0x2e   :  { %270 = vmatpush.bf16.msra.mxu0 %v517_v28 }
  0x2f   :  { %284 = vmatpush.bf16.msra.mxu1 %v521_v31 }
  0x30   :  { %298 = vmatpush.bf16.msra.mxu2 %v525_v32  ;;  %312 = vmatpush.bf16.msra.mxu3 %v529_v33 }
  0x31   :  { %271 = vmatmul.bf16.vlgmr.msra.gmra.mxu0 %v70_v35 }
  0x32   :  { %455 = vmatpush.bf16.msrb.mxu0 %v745_v34  ;;  %285 = vmatmul.bf16.vlgmr.msra.gmra.mxu1 %v70_v35 }
  0x33   :  { %469 = vmatpush.bf16.msrb.mxu1 %v753_v36  ;;  %299 = vmatmul.bf16.vlgmr.msra.gmra.mxu2 %v70_v35 }
  0x34   :  { %313 = vmatmul.bf16.vlgmr.msra.gmra.mxu3 %v70_v35 }
  0x36   :  { %456 = vmatpush.bf16.msrb.mxu0 %v744_v37 }
  0x37   :  { %470 = vmatpush.bf16.msrb.mxu1 %v752_v38 }
  0x3a   :  { %457 = vmatpush.bf16.msrb.mxu0 %v743_v39 }
  0x3b   :  { %471 = vmatpush.bf16.msrb.mxu1 %v751_v40 }
  0x3e   :  { %458 = vmatpush.bf16.msrb.mxu0 %v742_v41 }
  0x3f   :  { %472 = vmatpush.bf16.msrb.mxu1 %v750_v42 }
  0x42   :  { %459 = vmatpush.bf16.msrb.mxu0 %v741_v43 }
  0x43   :  { %473 = vmatpush.bf16.msrb.mxu1 %v749_v44 }
  0x46   :  { %460 = vmatpush.bf16.msrb.mxu0 %v740_v45 }
  0x47   :  { %474 = vmatpush.bf16.msrb.mxu1 %v748_v46 }
  0x4a   :  { %461 = vmatpush.bf16.msrb.mxu0 %v739_v47 }
  0x4b   :  { %475 = vmatpush.bf16.msrb.mxu1 %v747_v48 }
  0x4e   :  { %462 = vmatpush.bf16.msrb.mxu0 %v738_v49 }
  0x4f   :  { %476 = vmatpush.bf16.msrb.mxu1 %v746_v50 }
  0xae   :  { %v272_v51 = vpop.f32.mrf.mxu0 }
  0xaf   :  { %v286_v52 = vpop.f32.mrf.mxu1 }
  0xb6   :  { %v300_v53 = vpop.f32.mrf.mxu2  ;;  %v274_v55 = vpop.f32.mrf.mxu0 }
  0xb7   :  { %v314_v54 = vpop.f32.mrf.mxu3  ;;  %v319_v57 = vmul.f32 %v300_v53, %v272_v51  ;;  %v288_v58 = vpop.f32.mrf.mxu1 }
  0xb8   :  { %v320_v61 = vmul.f32 %v314_v54, %v286_v52 }
  0xbe   :  { %v302_v56 = vpop.f32.mrf.mxu2 }
  0xbf   :  { %v321_v59 = vmul.f32 %v302_v56, %v274_v55  ;;  %v316_v60 = vpop.f32.mrf.mxu3 }
  0xc0   :  { %v322_v62 = vmul.f32 %v316_v60, %v288_v58 }
  0xc1   :  { %v325_v63 = vpack.c.bf16 %v321_v59, %v319_v57 }
  0xc2   :  { %v326_v0 = vpack.c.bf16 %v322_v62, %v320_v61 }
  0xc3   :  { %463 = vmatmul.bf16.vlgmr.msrb.gmra.mxu0 %v325_v63 }
  0xc4   :  { %477 = vmatmul.bf16.vlgmr.msrb.gmra.mxu1 %v326_v0 }
 0x140   :  { %v464_v1 = vpop.f32.mrf.mxu0 }
 0x141   :  { %v478_v2 = vpop.f32.mrf.mxu1 }
 0x142   :  { %v479_v3 = vadd.f32 %v478_v2, %v464_v1 }
 0x144   :  { %492 = vst [vmem:[#allocation9] sm:$0xff] %v479_v3 }
 0x148   :  { %v466_v4 = vpop.f32.mrf.mxu0 }
 0x149   :  { %v480_v5 = vpop.f32.mrf.mxu1 }
 0x14a   :  { %v481_v6 = vadd.f32 %v480_v5, %v466_v4 }
 0x14c   :  { %493 = vst [vmem:[#allocation9 + $0x8] sm:$0xff] %v481_v6 }
 0x14d   :  { %506 = dma.vmem_to_hbm [thread:$0]  %s499_s4, 256, %s501_s7, [#allocation5], %s870_s24, %s870_s24, %s871_s25  }
 0x14e   :  { %864 = dma.done.wait [#allocation5], 256  }
 0x14f   :  { %865 = vsyncadd [#allocation5], 4294967040 }
 0x150   :  { %511 = vsyncpa [#allocation4], 1 }
 0x151   :  { %512 = vsyncpa [#allocation7], 1 }
 0x152   :  { %513 = vsyncpa [#allocation5], 1 }

</bundles_post_ra>
